<compile_context>
chip_gen: v7x
topology: tpu7x:2x2x1
jax: 0.10.0
libtpu: 0.0.40
codegen_flags: <defaults>
</compile_context>

<pallas_src>
import functools

import jax
import jax.numpy as jnp
from jax.experimental import pallas as pl
from jax.experimental.pallas import tpu as pltpu

_LANE = 128
_TARGET_BLOCK_BYTES = 4 * 1024 * 1024   # per input block (double-buffered by Pallas)
_MAX_WIDTH = 8192                       # cap on the (R, C) view's width C
_NUM_PARALLEL = 2                       # outer grid axis; 2 TensorCores on v7x


def _make_gray_loss_kernel(tb, c, n_rows, nb, g_seq, ragged, overcover):
    """Builds the streaming-reduction kernel for an (n_rows, c) view of x."""

    def kernel(x_ref, o_ref):
        o = pl.program_id(0)            # "parallel" outer axis
        i = pl.program_id(1)            # "arbitrary" streaming axis
        rb = o * g_seq + i              # global row-block index

        @pl.when(i == 0)
        def _init():
            o_ref[...] = jnp.zeros_like(o_ref)

        x = x_ref[...].astype(jnp.float32)
        diff = jnp.abs(x - 0.5)

        def accumulate(d):
            # Vreg-aligned slab adds into the resident (8, c) accumulator:
            # pure VALU work, no cross-lane reduction, no sub-lane stores.
            if tb == 8:
                part = d
            else:
                part = jnp.sum(d.reshape(tb // 8, 8, c), axis=0)
            o_ref[...] += part

        if not (ragged or overcover):
            accumulate(diff)            # hot path: no masks, no branches
        else:
            conds = []
            if ragged:
                conds.append(rb != nb - 1)
            if overcover:
                conds.append(rb < nb)
            full_blk = functools.reduce(lambda a, b: a & b, conds)

            @pl.when(full_blk)
            def _full():
                accumulate(diff)

            if ragged:
                # Row masking only ever runs for the single boundary block.
                @pl.when(rb == nb - 1)
                def _tail():
                    rows = (jax.lax.broadcasted_iota(jnp.int32, (tb, c), 0)
                            + rb * tb)
                    accumulate(jnp.where(rows < n_rows, diff, 0.0))

    return kernel


def gray_loss(x: jax.Array) -> jax.Array:
    """Pallas implementation of GrayLoss.forward: 1 / mean(|x - 0.5|)."""
    if not jnp.issubdtype(x.dtype, jnp.floating):
        x = x.astype(jnp.float32)

    n_total = int(x.size)
    itemsize = jnp.dtype(x.dtype).itemsize
    sub = 8 * max(1, 4 // itemsize)     # sublane multiple: 8 f32 / 16 bf16 / 32 i8

    flat = x.reshape(-1)                # contiguous flatten: metadata only
    n = n_total
    # Rare path (tiny inputs or N % 128 != 0): pad once with 0.5, which
    # contributes exactly zero to sum(|x - 0.5|).
    n_padded = max(sub * _LANE, ((n + _LANE - 1) // _LANE) * _LANE)
    if n_padded != n:
        flat = jnp.pad(flat, (0, n_padded - n), constant_values=0.5)
        n = n_padded

    # Width C: largest multiple of 128 that divides n exactly (=> no lane
    # masking ever), capped so rows >= sub and the partial-sum output is small.
    c_bound = min(_MAX_WIDTH, n // sub)
    m = n // _LANE
    d = 1
    for cand in range(min(m, c_bound // _LANE), 0, -1):
        if m % cand == 0:
            d = cand
            break
    c = _LANE * d
    r = n // c
    x2 = flat.reshape(r, c)

    # Rows per block: ~_TARGET_BLOCK_BYTES with full sublane occupancy; prefer
    # a nearby TB that divides r exactly so no boundary block exists at all.
    rows_target = max(sub, (_TARGET_BLOCK_BYTES // itemsize) // c)
    tb = min(r, rows_target)
    tb = (tb // sub) * sub
    if r % tb != 0:
        for cand in range(tb, max(sub, tb // 2) - 1, -sub):
            if r % cand == 0:
                tb = cand
                break
    nb = (r + tb - 1) // tb             # number of row blocks
    ragged = (r % tb) != 0

    g_par = _NUM_PARALLEL if nb >= _NUM_PARALLEL else 1
    g_seq = (nb + g_par - 1) // g_par
    overcover = (g_par * g_seq) != nb   # trailing clamped blocks are skipped

    def in_map(o, i):
        rb = o * g_seq + i
        if overcover:
            rb = jnp.minimum(rb, nb - 1)
        return (rb, 0)

    kernel = _make_gray_loss_kernel(tb, c, r, nb, g_seq, ragged, overcover)

    partials = pl.pallas_call(
        kernel,
        out_shape=jax.ShapeDtypeStruct((g_par * 8, c), jnp.float32),
        grid_spec=pltpu.PrefetchScalarGridSpec(
            num_scalar_prefetch=0,
            grid=(g_par, g_seq),
            in_specs=[pl.BlockSpec((tb, c), in_map)],
            out_specs=pl.BlockSpec((8, c), lambda o, i: (o, 0)),
        ),
        compiler_params=pltpu.CompilerParams(
            dimension_semantics=("parallel", "arbitrary"),
            vmem_limit_bytes=32 * 1024 * 1024,
        ),
    )(x2)

    # Single cross-lane reduction + reciprocal, once, off the streaming path.
    # 1 / mean(|x - 0.5|) == N / sum(|x - 0.5|)
    return jnp.float32(n_total) / jnp.sum(partials)


def _gray_loss_ref(x: jax.Array) -> jax.Array:
    """Pure-JAX reference mirroring the torch module."""
    y = jnp.full_like(x, 0.5)
    return 1.0 / jnp.mean(jnp.abs(x.astype(jnp.float32) - y.astype(jnp.float32)))


if __name__ == "__main__":
    key = jax.random.PRNGKey(0)
    cases = [
        ((2, 4, 16, 16), jnp.float32),    # exact tiling, single block
        ((2, 3, 16, 16), jnp.float32),    # ragged boundary block + parallel axis
        ((2, 3, 5, 7), jnp.float32),      # N not divisible by 128 (pad path)
        ((2, 4, 16, 16), jnp.bfloat16),   # bf16 input, 16-row sublane blocks
    ]
    for idx, (shape, dtype) in enumerate(cases):
        k = jax.random.fold_in(key, idx)
        x = jax.random.uniform(k, shape, dtype=jnp.float32).astype(dtype)
        out = jax.block_until_ready(gray_loss(x))
        ref = jax.block_until_ready(_gray_loss_ref(x))
        assert out.shape == (), out.shape
        assert jnp.allclose(out, ref, atol=1e-3, rtol=1e-3), (shape, dtype, out, ref)
    print("KERNEL_OK")
</pallas_src>

<mosaic_0001>
module attributes {stable_mosaic.version = 11 : i64} {
  func.func @kernel(%arg0: i32, %arg1: i32, %arg2: memref<8x256xf32, #tpu.memory_space<vmem>>, %arg3: memref<8x256xf32, #tpu.memory_space<vmem>>) attributes {dimension_semantics = [#tpu.dimension_semantics<parallel>, #tpu.dimension_semantics<arbitrary>], iteration_bounds = array<i64: 1, 1>, scalar_prefetch = 0 : i64, scratch_operands = 0 : i64, tpu.core_type = #tpu.core_type<tc>, window_params = [{transform_indices = @transform_0, window_bounds = array<i64: 8, 256>}, {transform_indices = @transform_1, window_bounds = array<i64: 8, 256>}]} {
    %c0_i32 = arith.constant 0 : i32
    %0 = arith.cmpi eq, %arg1, %c0_i32 : i32
    %1 = arith.extui %0 : i1 to i32
    %c0_i32_0 = arith.constant 0 : i32
    %2 = arith.cmpi ne, %1, %c0_i32_0 : i32
    scf.if %2 {
      %cst_6 = arith.constant 0.000000e+00 : f32
      %10 = vector.broadcast %cst_6 : f32 to vector<8x256xf32>
      %c0_7 = arith.constant 0 : index
      %c0_8 = arith.constant 0 : index
      %11 = vector.load %arg3[%c0_7, %c0_8] : memref<8x256xf32, #tpu.memory_space<vmem>>, vector<8x256xf32>
      tpu.vector_store %arg3[%c0_7, %c0_8], %10 {strides = array<i32>} : memref<8x256xf32, #tpu.memory_space<vmem>>, vector<8x256xf32>,
    } else {
    }
    %c0 = arith.constant 0 : index
    %c0_1 = arith.constant 0 : index
    %3 = vector.load %arg2[%c0, %c0_1] : memref<8x256xf32, #tpu.memory_space<vmem>>, vector<8x256xf32>
    %cst = arith.constant 5.000000e-01 : f32
    %4 = vector.broadcast %cst : f32 to vector<8x256xf32>
    %5 = arith.subf %3, %4 : vector<8x256xf32>
    %6 = math.absf %5 : vector<8x256xf32>
    %c0_2 = arith.constant 0 : index
    %c0_3 = arith.constant 0 : index
    %7 = vector.load %arg3[%c0_2, %c0_3] : memref<8x256xf32, #tpu.memory_space<vmem>>, vector<8x256xf32>
    %8 = arith.addf %7, %6 : vector<8x256xf32>
    %c0_4 = arith.constant 0 : index
    %c0_5 = arith.constant 0 : index
    %9 = vector.load %arg3[%c0_4, %c0_5] : memref<8x256xf32, #tpu.memory_space<vmem>>, vector<8x256xf32>
    tpu.vector_store %arg3[%c0_4, %c0_5], %8 {strides = array<i32>} : memref<8x256xf32, #tpu.memory_space<vmem>>, vector<8x256xf32>,
    return
  }
  func.func @transform_0(%arg0: i32, %arg1: i32) -> (i32, i32) {
    %c1_i32 = arith.constant 1 : i32
    %0 = arith.muli %arg0, %c1_i32 : i32
    %1 = arith.addi %0, %arg1 : i32
    %c0_i32 = arith.constant 0 : i32
    %c0_i32_0 = arith.constant 0 : i32
    return %1, %c0_i32 : i32, i32
  }
  func.func @transform_1(%arg0: i32, %arg1: i32) -> (i32, i32) {
    %c0_i32 = arith.constant 0 : i32
    %c0_i32_0 = arith.constant 0 : i32
    return %arg0, %c0_i32 : i32, i32
  }
}

</mosaic_0001>

<bundles_post_ra>
// kernel: tpu_custom_call.1
= control target key start
LH: loop header
LB: loop body
LE: loop exit
PB: predicated region body
PF: predicated region fallthrough
CT: control target
= control target key end

     0   :  { %6 = vsyncpa [#allocation3], 0  ;;  %s148_s0 = inlined_call_operand.hbm [shape: f32[8,256], index: 0, kind: input, shape index: {}]   ;;  %s149_s1 = inlined_call_operand.hbm [shape: f32[8,256], index: 1, kind: output, shape index: {}]  }
   0x1   :  { %7 = vsyncpa [#allocation4], 0  ;;  %s112_s6 = smov [#allocation2]   ;;  %s64_s10 = scalar_lea.hbm %s148_s0, 256 }
   0x2   :  { %s18_s7 = sshll.u32 %s112_s6, 4  ;;  %p65_p0 = scmp.ne.s32.totalorder %s148_s0, %s64_s10  ;;  %s19_s7 = int_to_ptr.vmem [resolvable:$true] %s18_s7 }
   0x3   :  { %p68_p1 = scmp.lt.u32.totalorder %s64_s10, %s148_s0 }
   0x5   :  { %p70_p2 = pnand %p68_p1, %p65_p0 }
   0x7   :  { %73 = shalt.err (!%p70_p2)
}
   0x8   :  { %s74_s15 = scalar_lea.vmem %s19_s7, 256  ;;  %p79_p4 = scmp.lt.s32.totalorder %s19_s7, %s19_s7 }
   0x9   :  { %p75_p3 = scmp.ne.s32.totalorder %s19_s7, %s74_s15  ;;  %p80_p5 = scmp.lt.s32.totalorder %s74_s15, %s74_s15 }
   0xb   :  { %p81_p6 = por %p80_p5, %p79_p4 }
   0xd   :  { %p82_p7 = pnand %p81_p6, %p75_p3 }
   0xf   :  { %85 = shalt.err (!%p82_p7)
}
  0x10   :  { %21 = dma.hbm_to_vmem [thread:$0]  %s148_s0, 256, %s19_s7, [#allocation3]  }
  0x11   :  { %108 = dma.done.wait [#allocation3], 256  }
  0x12   :  { %109 = vsyncadd [#allocation3], 4294967040  ;;  %v32_v0 = vld [vmem:[#allocation2] sm:$0xff]  ;;  %v33_v1 = vld [vmem:[#allocation2 + $0x8] sm:$0xff]  ;;  %s113_s18 = smov [#allocation5]  }
  0x13   :  { %v59_v2 = vadd.f32 -0.5, %v32_v0  ;;  %v60_v3 = vadd.f32 -0.5, %v33_v1  ;;  %s50_s19 = sshll.u32 %s113_s18, 4  ;;  %s51_s19 = int_to_ptr.vmem [resolvable:$true] %s50_s19 }
  0x14   :  { %s86_s20 = scalar_lea.vmem %s51_s19, 256  ;;  %p91_p9 = scmp.lt.s32.totalorder %s51_s19, %s51_s19 }
  0x15   :  { %v36_v4 = vand.u32 2147483647, %v59_v2  ;;  %v37_v5 = vand.u32 2147483647, %v60_v3  ;;  %p87_p8 = scmp.ne.s32.totalorder %s51_s19, %s86_s20  ;;  %p92_p10 = scmp.lt.s32.totalorder %s86_s20, %s86_s20 }
  0x17   :  { %42 = vst [vmem:[#allocation5] sm:$0xff] %v36_v4  ;;  %43 = vst [vmem:[#allocation5 + $0x8] sm:$0xff] %v37_v5  ;;  %p93_p11 = por %p92_p10, %p91_p9 }
  0x19   :  { %p94_p12 = pnand %p93_p11, %p87_p8 }
  0x1b   :  { %97 = shalt.err (!%p94_p12)
}
  0x1c   :  { %s98_s22 = scalar_lea.hbm %s149_s1, 256 }
  0x1d   :  { %p99_p13 = scmp.ne.s32.totalorder %s149_s1, %s98_s22  ;;  %p102_p0 = scmp.lt.u32.totalorder %s98_s22, %s149_s1 }
  0x1f   :  { %p104_p1 = pnand %p102_p0, %p99_p13 }
  0x21   :  { %107 = shalt.err (!%p104_p1)
}
  0x22   :  { %53 = dma.vmem_to_hbm [thread:$0]  %s51_s19, 256, %s149_s1, [#allocation4]  }
  0x23   :  { %110 = dma.done.wait [#allocation4], 256  }
  0x24   :  { %111 = vsyncadd [#allocation4], 4294967040 }
  0x25   :  { %57 = vsyncpa [#allocation3], 1 }
  0x26   :  { %58 = vsyncpa [#allocation4], 1 }

</bundles_post_ra>
